<compile_context>
chip_gen: v6e
topology: v6e:2x2x1
jax: 0.10.0
libtpu: 0.0.40
codegen_flags: <defaults>
</compile_context>

<pallas_src>
import functools

import jax
import jax.numpy as jnp
from jax.experimental import pallas as pl
from jax.experimental.pallas import tpu as pltpu


# ----------------------------------------------------------------------------
# Pallas kernel: cosface head (class-tiled)
#   cosine = F.linear(F.normalize(x), F.normalize(w_tot))
#   output = s * (one_hot(label) * (cosine - m) + (1 - one_hot(label)) * cosine)
#          = where(class == label, s*cosine - s*m, s*cosine)
# Weights arrive already L2-normalized (bf16, padded along the class axis).
# ----------------------------------------------------------------------------
def _cosface_kernel(x_ref, wn_ref, label_ref, out_ref, cos_ref, *, s, m, eps):
    j = pl.program_id(0)                               # class-tile index

    # Normalize the (small) activation block in f32 via rsqrt, cast to bf16 for the MXU.
    x = x_ref[...].astype(jnp.float32)                 # [B, D]
    inv_norm = jax.lax.rsqrt(
        jnp.maximum(jnp.sum(x * x, axis=-1, keepdims=True), eps * eps))
    xn = (x * inv_norm).astype(jnp.bfloat16)           # [B, D] bf16

    # bf16 x bf16 -> f32 MXU matmul, contracting over D (no transpose of wn).
    cosine = jax.lax.dot_general(
        xn, wn_ref[...],
        dimension_numbers=(((1,), (1,)), ((), ())),
        preferred_element_type=jnp.float32)            # [B, TC] f32

    b, tc = cosine.shape
    cls_ids = jax.lax.broadcasted_iota(jnp.int32, (b, tc), 1) + j * tc
    is_target = cls_ids == label_ref[...]              # label_ref is [B, 1] int32

    sc = cosine * s
    out_ref[...] = jnp.where(is_target, sc - (s * m), sc)
    cos_ref[...] = cosine


def _round_up(n, mult):
    return ((n + mult - 1) // mult) * mult


def _pick_class_tiling(n_cls):
    """Pad the class axis to a multiple of 128 and pick a lane-dense tile that divides it."""
    c_pad = _round_up(n_cls, 128)
    tile = 128
    for cand in (512, 384, 256, 128):
        if c_pad % cand == 0:
            tile = cand
            break
    return c_pad, tile


def cosface_head(x, wn_padded, label, n_cls, *, s, m, class_tile):
    """Pallas wrapper.

    x         : [B, D] embeddings (any float dtype)
    wn_padded : [C_pad, D] bf16, already L2-normalized, zero-padded rows past n_cls
    label     : [B] int
    Returns (output, cosine), each [B, n_cls] float32.
    """
    B, D = x.shape
    C_pad = wn_padded.shape[0]
    assert C_pad % class_tile == 0
    grid = (C_pad // class_tile,)

    label2d = label.astype(jnp.int32).reshape(B, 1)
    kernel = functools.partial(_cosface_kernel, s=float(s), m=float(m), eps=1e-12)

    out, cos = pl.pallas_call(
        kernel,
        out_shape=(
            jax.ShapeDtypeStruct((B, C_pad), jnp.float32),
            jax.ShapeDtypeStruct((B, C_pad), jnp.float32),
        ),
        grid=grid,
        in_specs=[
            pl.BlockSpec((B, D), lambda j: (0, 0)),             # x      (resident)
            pl.BlockSpec((class_tile, D), lambda j: (j, 0)),    # wn     (tiled over classes)
            pl.BlockSpec((B, 1), lambda j: (0, 0)),             # label  (resident)
        ],
        out_specs=(
            pl.BlockSpec((B, class_tile), lambda j: (0, j)),
            pl.BlockSpec((B, class_tile), lambda j: (0, j)),
        ),
        compiler_params=pltpu.CompilerParams(
            dimension_semantics=("parallel",)),
    )(x, wn_padded, label2d)

    return out[:, :n_cls], cos[:, :n_cls]


# ----------------------------------------------------------------------------
# MYNET (Pallas) — parameters initialized deterministically in-script.
# ----------------------------------------------------------------------------
class MYNETPallas:
    def __init__(self, *, num_features, base_class, num_classes, way, s, m,
                 mode="get_logit_cos", seed=0):
        self.num_features = num_features
        self.s = s
        self.m = m
        self.mode = mode

        n_sess = (num_classes - base_class) // way + 1
        key = jax.random.PRNGKey(seed)
        self.angle_w = []
        for i in range(n_sess):
            if i == 0:
                # nn.init.xavier_uniform_ on a [base_class, num_features] weight:
                # limit = sqrt(6 / (fan_in + fan_out)), fan_in=num_features, fan_out=base_class
                limit = (6.0 / (base_class + num_features)) ** 0.5
                key, sub = jax.random.split(key)
                self.angle_w.append(
                    jax.random.uniform(sub, (base_class, num_features),
                                       jnp.float32, -limit, limit))
            else:
                # matches nn.Parameter(torch.zeros(way, num_features))
                self.angle_w.append(jnp.zeros((way, num_features), jnp.float32))

        # Normalized class-prototype cache, keyed by session: w_tot only changes when the
        # session changes, so the [C, D] normalization is hoisted out of the per-batch kernel.
        self._wn_cache = {}

    def _repr_tot(self, sess):
        # repr_tot(sess, angle_w): concat class prototypes of sessions 0..sess
        return jnp.concatenate([self.angle_w[i] for i in range(sess + 1)], axis=0)

    def _normalized_weights(self, sess):
        if sess not in self._wn_cache:
            w = self._repr_tot(sess)                                  # [C, D] f32
            n_cls = w.shape[0]
            inv = jax.lax.rsqrt(
                jnp.maximum(jnp.sum(w * w, axis=-1, keepdims=True), 1e-24))
            wn = (w * inv).astype(jnp.bfloat16)                       # normalized, bf16
            c_pad, tile = _pick_class_tiling(n_cls)
            wn_padded = jnp.zeros((c_pad, w.shape[1]), jnp.bfloat16).at[:n_cls].set(wn)
            self._wn_cache[sess] = (wn_padded, n_cls, tile)
        return self._wn_cache[sess]

    def forward_cosface(self, x, label, sess, get_logit=False):
        wn_padded, n_cls, tile = self._normalized_weights(sess)
        if not get_logit:
            # TODO(synk): encode(x) needs the ResNet backbone; not translated.
            raise NotImplementedError("encoder path not translated to Pallas")
        return cosface_head(x, wn_padded, label, n_cls,
                            s=self.s, m=self.m, class_tile=tile)

    def __call__(self, x, label=None, sess=None):
        if self.mode == "get_logit_cos":
            assert label is not None and sess is not None
            return self.forward_cosface(x, label, sess, get_logit=True)
        elif self.mode == "cosface":
            assert label is not None
            return self.forward_cosface(x, label, sess, get_logit=False)
        elif self.mode == "encoder":
            # TODO(synk): ResNet encoder forward not translated.
            raise NotImplementedError("encoder mode not translated to Pallas")
        raise ValueError(f"unknown mode {self.mode}")


# ----------------------------------------------------------------------------
# Pure-JAX f32 reference (for correctness check only)
# ----------------------------------------------------------------------------
def _ref_cosface(x, w_tot, label, s, m):
    xn = x / jnp.maximum(jnp.linalg.norm(x, axis=-1, keepdims=True), 1e-12)
    wn = w_tot / jnp.maximum(jnp.linalg.norm(w_tot, axis=-1, keepdims=True), 1e-12)
    cosine = xn @ wn.T
    phi = cosine - m
    one_hot = jax.nn.one_hot(label, w_tot.shape[0], dtype=jnp.float32)
    out = (one_hot * phi + (1.0 - one_hot) * cosine) * s
    return out, cosine


if __name__ == "__main__":
    # Small, forward-consistent shapes:
    #   num_features (embedding dim) = 32, base_class = 8, way = 4, num_classes = 20
    #   -> n_sess = 4; test with sess = 2 -> n_cls = 8 + 2*4 = 16; batch B = 2.
    B, D = 2, 32
    base_class, way, num_classes = 8, 4, 20
    sess = 2
    s_scale, margin = 16.0, 0.1

    net = MYNETPallas(num_features=D, base_class=base_class, num_classes=num_classes,
                      way=way, s=s_scale, m=margin, mode="get_logit_cos", seed=0)

    key = jax.random.PRNGKey(0)
    kx, kl = jax.random.split(key)
    x = jax.random.normal(kx, (B, D), dtype=jnp.float32)
    label = jax.random.randint(kl, (B,), 0, base_class, dtype=jnp.int32)

    out, cos = net(x, label=label, sess=sess)
    out, cos = jax.block_until_ready(out), jax.block_until_ready(cos)

    # Verify against the pure-JAX f32 reference (bf16 MXU -> loosened tolerance).
    w_tot = net._repr_tot(sess)
    ref_out, ref_cos = _ref_cosface(x, w_tot, label, s_scale, margin)
    assert out.shape == ref_out.shape and cos.shape == ref_cos.shape, "shape mismatch"
    assert jnp.allclose(cos, ref_cos, atol=2e-2, rtol=1e-2), "cosine mismatch"
    assert jnp.allclose(out, ref_out, atol=4e-1, rtol=1e-2), "output mismatch"

    print("KERNEL_OK")
</pallas_src>

<mosaic_0001>
module attributes {stable_mosaic.version = 11 : i64} {
  func.func @_cosface_kernel(%arg0: i32, %arg1: memref<2x32xf32, #tpu.memory_space<vmem>>, %arg2: memref<128x32xbf16, #tpu.memory_space<vmem>>, %arg3: memref<2x1xi32, #tpu.memory_space<vmem>>, %arg4: memref<2x128xf32, #tpu.memory_space<vmem>>, %arg5: memref<2x128xf32, #tpu.memory_space<vmem>>) attributes {dimension_semantics = [#tpu.dimension_semantics<parallel>], iteration_bounds = array<i64: 1>, scalar_prefetch = 0 : i64, scratch_operands = 0 : i64, tpu.core_type = #tpu.core_type<tc>, window_params = [{pipeline_mode = #tpu.pipeline_mode<synchronous>, transform_indices = @transform_0, window_bounds = array<i64: 2, 32>}, {transform_indices = @transform_1, window_bounds = array<i64: 128, 32>}, {pipeline_mode = #tpu.pipeline_mode<synchronous>, transform_indices = @transform_2, window_bounds = array<i64: 2, 1>}, {transform_indices = @transform_3, window_bounds = array<i64: 2, 128>}, {transform_indices = @transform_4, window_bounds = array<i64: 2, 128>}]} {
    %c0 = arith.constant 0 : index
    %c0_0 = arith.constant 0 : index
    %0 = vector.load %arg1[%c0, %c0_0] : memref<2x32xf32, #tpu.memory_space<vmem>>, vector<2x32xf32>
    %1 = arith.mulf %0, %0 : vector<2x32xf32>
    %cst = arith.constant dense<0.000000e+00> : vector<2xf32>
    %2 = vector.multi_reduction <add>, %1, %cst [1] : vector<2x32xf32> to vector<2xf32>
    %3 = vector.shape_cast %2 : vector<2xf32> to vector<2x1xf32>
    %cst_1 = arith.constant 1.000000e-24 : f32
    %4 = vector.broadcast %cst_1 : f32 to vector<2x1xf32>
    %5 = arith.maximumf %3, %4 : vector<2x1xf32>
    %6 = math.rsqrt %5 : vector<2x1xf32>
    %7 = vector.broadcast %6 : vector<2x1xf32> to vector<2x32xf32>
    %8 = arith.mulf %0, %7 : vector<2x32xf32>
    %9 = arith.truncf %8 : vector<2x32xf32> to vector<2x32xbf16>
    %c0_2 = arith.constant 0 : index
    %c0_3 = arith.constant 0 : index
    %10 = vector.load %arg2[%c0_2, %c0_3] : memref<128x32xbf16, #tpu.memory_space<vmem>>, vector<128x32xbf16>
    %cst_4 = arith.constant dense<0.000000e+00> : vector<2x128xf32>
    %11 = tpu.matmul %9, %10, %cst_4 {dimension_numbers = #tpu.dot_dimension_numbers<[1], [1], [0], [0], [0, 0, 1, 0], [], []>} : vector<2x32xbf16>, vector<128x32xbf16>, vector<2x128xf32> -> vector<2x128xf32>
    %12 = tpu.iota {dimensions = array<i32: 1>} : vector<2x128xi32>
    %c128_i32 = arith.constant 128 : i32
    %13 = arith.muli %arg0, %c128_i32 : i32
    %14 = vector.broadcast %13 : i32 to vector<2x128xi32>
    %15 = arith.addi %12, %14 : vector<2x128xi32>
    %c0_5 = arith.constant 0 : index
    %c0_6 = arith.constant 0 : index
    %16 = vector.load %arg3[%c0_5, %c0_6] : memref<2x1xi32, #tpu.memory_space<vmem>>, vector<2x1xi32>
    %17 = vector.broadcast %16 : vector<2x1xi32> to vector<2x128xi32>
    %18 = arith.cmpi eq, %15, %17 : vector<2x128xi32>
    %cst_7 = arith.constant 1.600000e+01 : f32
    %19 = vector.broadcast %cst_7 : f32 to vector<2x128xf32>
    %20 = arith.mulf %11, %19 : vector<2x128xf32>
    %cst_8 = arith.constant 1.600000e+00 : f32
    %21 = vector.broadcast %cst_8 : f32 to vector<2x128xf32>
    %22 = arith.subf %20, %21 : vector<2x128xf32>
    %23 = arith.select %18, %22, %20 : vector<2x128xi1>, vector<2x128xf32>
    %c0_9 = arith.constant 0 : index
    %c0_10 = arith.constant 0 : index
    %24 = vector.load %arg4[%c0_9, %c0_10] : memref<2x128xf32, #tpu.memory_space<vmem>>, vector<2x128xf32>
    tpu.vector_store %arg4[%c0_9, %c0_10], %23 {strides = array<i32>} : memref<2x128xf32, #tpu.memory_space<vmem>>, vector<2x128xf32>,
    %c0_11 = arith.constant 0 : index
    %c0_12 = arith.constant 0 : index
    %25 = vector.load %arg5[%c0_11, %c0_12] : memref<2x128xf32, #tpu.memory_space<vmem>>, vector<2x128xf32>
    tpu.vector_store %arg5[%c0_11, %c0_12], %11 {strides = array<i32>} : memref<2x128xf32, #tpu.memory_space<vmem>>, vector<2x128xf32>,
    return
  }
  func.func @transform_0(%arg0: i32) -> (i32, i32) {
    %c0_i32 = arith.constant 0 : i32
    %c0_i32_0 = arith.constant 0 : i32
    %c0_i32_1 = arith.constant 0 : i32
    return %c0_i32, %c0_i32_0 : i32, i32
  }
  func.func @transform_1(%arg0: i32) -> (i32, i32) {
    %c0_i32 = arith.constant 0 : i32
    %c0_i32_0 = arith.constant 0 : i32
    return %arg0, %c0_i32 : i32, i32
  }
  func.func @transform_2(%arg0: i32) -> (i32, i32) {
    %c0_i32 = arith.constant 0 : i32
    %c0_i32_0 = arith.constant 0 : i32
    %c0_i32_1 = arith.constant 0 : i32
    return %c0_i32, %c0_i32_0 : i32, i32
  }
  func.func @transform_3(%arg0: i32) -> (i32, i32) {
    %c0_i32 = arith.constant 0 : i32
    %c0_i32_0 = arith.constant 0 : i32
    return %c0_i32, %arg0 : i32, i32
  }
  func.func @transform_4(%arg0: i32) -> (i32, i32) {
    %c0_i32 = arith.constant 0 : i32
    %c0_i32_0 = arith.constant 0 : i32
    return %c0_i32, %arg0 : i32, i32
  }
}

</mosaic_0001>

<bundles_post_ra>
// kernel: tpu_custom_call.1
= control target key start
LH: loop header
LB: loop body
LE: loop exit
PB: predicated region body
PF: predicated region fallthrough
CT: control target
= control target key end

     0   :  { %10 = vsyncpa [#allocation3], 0  ;;  %vm21_vm0 = vcmask 254976   ;;  %v295_v2 = vmov 0.0   ;;  %vm85_vm1 = vcmask 261120   ;;  %s370_s0 = inlined_call_operand.vmem [shape: f32[2,32], index: 0, kind: input, shape index: {}]   ;;  %s371_s1 = inlined_call_operand.vmem [shape: bf16[128,32], index: 1, kind: input, shape index: {}]   ;;  %s372_s2 = inlined_call_operand.vmem [shape: s32[2,1], index: 2, kind: input, shape index: {}]   ;;  %s373_s3 = inlined_call_operand.hbm [shape: f32[2,128], index: 3, kind: output, shape index: {0}]   ;;  %s374_s4 = inlined_call_operand.hbm [shape: f32[2,128], index: 4, kind: output, shape index: {1}]  }
   0x1   :  { %v19_v0 = vld [vmem:[%s370_s0] sm:$0x3]  ;;  %215 = vmatprep.subr.bf16.mxu0 %v295_v2  ;;  %v241_v3 = vld [vmem:[%s371_s1 + $0x38] sm:$0xff]   ;;  %v242_v6 = vld [vmem:[%s371_s1 + $0x30] sm:$0xff]  }
   0x2   :  { %v20_v1 = vmul.f32 %v19_v0, %v19_v0  ;;  %v111_v5 = vsel %vm85_vm1, %v241_v3, 0 }
   0x3   :  { %216 = vmatpush3.bf16.xpose.msra.mxu0 %v111_v5 }
   0x4   :  { %v22_v4 = vsel %vm21_vm0, %v20_v1, 0.0  ;;  %217 = vmatprep.subr.bf16.mxu0 %v295_v2 }
   0x5   :  { %23 = vadd.xlane.f32.xlu0 %v22_v4 }
   0x6   :  { %11 = vsyncpa [#allocation5], 0  ;;  %v108_v7 = vsel %vm85_vm1, %v242_v6, 0  ;;  %v243_v8 = vld [vmem:[%s371_s1 + $0x28] sm:$0xff]   ;;  %vm296_vm2 = vmmov 0   ;;  %v244_v10 = vld [vmem:[%s371_s1 + $0x20] sm:$0xff]   ;;  %v153_v27 = vlaneseq }
   0x7   :  { %v105_v9 = vsel %vm85_vm1, %v243_v8, 0  ;;  %231 = vmatprep.mubr.msk.bf16.mxu0 %vm296_vm2, %v295_v2  ;;  %v102_v11 = vsel %vm85_vm1, %v244_v10, 0  ;;  %v245_v12 = vld [vmem:[%s371_s1 + $0x18] sm:$0xff]   ;;  %v158_v14 = vld [vmem:[%s372_s2] sm:$0x3]  ;;  %v297_v15 = vmov 0  }
   0x8   :  { %v99_v13 = vsel %vm85_vm1, %v245_v12, 0  ;;  %240 = vset.pattern.permute.xlu0 %v297_v15  ;;  %v246_v16 = vld [vmem:[%s371_s1 + $0x10] sm:$0xff]   ;;  %v247_v18 = vld [vmem:[%s371_s1 + $0x8] sm:$0xff]   ;;  %v248_v20 = vld [vmem:[%s371_s1] sm:$0xff]   ;;  %s298_s7 = smov [#allocation4]   ;;  %v154_v28 = vand.u32 127, %v153_v27 }
   0x9   :  { %v96_v17 = vsel %vm85_vm1, %v246_v16, 0  ;;  %v93_v19 = vsel %vm85_vm1, %v247_v18, 0  ;;  %v90_v21 = vsel %vm85_vm1, %v248_v20, 0  ;;  %s184_s8 = sshll.u32 %s298_s7, 4  ;;  %s299_s1 = smov [#allocation2]   ;;  %s185_s8 = int_to_ptr.vmem [resolvable:$true] %s184_s8 }
   0xa   :  { %s174_s9 = sshll.u32 %s299_s1, 4  ;;  %s251_s10 = scalar_lea.vmem %s185_s8, 32  ;;  %s175_s9 = int_to_ptr.vmem [resolvable:$true] %s174_s9 }
   0xb   :  { %218 = vmatpush3.bf16.xpose.msra.mxu0 %v108_v7  ;;  %p252_p0 = scmp.ne.s32.totalorder %s185_s8, %s251_s10  ;;  %p256_p1 = scmp.lt.s32.totalorder %s185_s8, %s185_s8 }
   0xc   :  { %219 = vmatprep.subr.bf16.mxu0 %v295_v2  ;;  %p257_p2 = scmp.lt.s32.totalorder %s251_s10, %s251_s10 }
   0xe   :  { %p258_p3 = por %p257_p2, %p256_p1 }
  0x10   :  { %p259_p4 = pnand %p258_p3, %p252_p0 }
  0x13   :  { %220 = vmatpush3.bf16.xpose.msra.mxu0 %v105_v9 }
  0x14   :  { %221 = vmatprep.subr.bf16.mxu0 %v295_v2 }
  0x1b   :  { %222 = vmatpush3.bf16.xpose.msra.mxu0 %v102_v11  ;;  %160 = vperm.xlu0 %240, %v158_v14  }
  0x1c   :  { %223 = vmatprep.subr.bf16.mxu0 %v295_v2 }
  0x23   :  { %224 = vmatpush3.bf16.xpose.msra.mxu0 %v99_v13 }
  0x24   :  { %225 = vmatprep.subr.bf16.mxu0 %v295_v2 }
  0x2b   :  { %226 = vmatpush3.bf16.xpose.msra.mxu0 %v96_v17 }
  0x2c   :  { %227 = vmatprep.subr.bf16.mxu0 %v295_v2 }
  0x33   :  { %228 = vmatpush3.bf16.xpose.msra.mxu0 %v93_v19 }
  0x34   :  { %229 = vmatprep.subr.bf16.mxu0 %v295_v2 }
  0x3b   :  { %230 = vmatpush3.bf16.xpose.msra.mxu0 %v90_v21 }
  0x8e   :  { %v24_v22 = vpop.xlane.xlu0 %23 }
  0x8f   :  { %v25_v23 = vmax.f32 %v24_v22, 1e-24 }
  0x91   :  { %249 = vrsqrt.f32 %v25_v23 }
  0x96   :  { %v161_v29 = vpop.permute.xlu0 %160 }
  0x97   :  { %vm162_vm3 = vcmp.eq.s32.totalorder %v154_v28, %v161_v29 }
  0x9e   :  { %v250_v24 = vpop.eup %249 }
  0x9f   :  { %v27_v25 = vmul.f32 %v250_v24, %v19_v0 }
  0xa1   :  { %v28_v26 = vpack.c.bf16 %v27_v25, %v27_v25 }
  0xa3   :  { %232 = vmatmul.mubr.msk.bf16.vlgmr.msra.gmra.mxu0 %vm85_vm1, %v28_v26 }
 0x163   :  { %v147_v30 = vpop.f32.mrf.mxu0 }
 0x164   :  { %v163_v31 = vmul.f32 16.0, %v147_v30  ;;  %167 = vst [vmem:[#allocation4] sm:$0x3] %v147_v30 }
 0x165   :  { %v233_v32 = vpop.f32.mrf.mxu0 }
 0x166   :  { %262 = shalt.err (!%p259_p4)
}
 0x167   :  { %187 = dma.vmem_to_hbm [thread:$0]  %s185_s8, 32, %s374_s4, [#allocation5]   ;;  %v205_v33 = vadd.f32 -1.6, %v163_v31  ;;  %v150_v34 = vpop.f32.mrf.mxu0 }
 0x168   :  { %s271_s13 = scalar_lea.vmem %s175_s9, 32  ;;  %p276_p6 = scmp.lt.s32.totalorder %s175_s9, %s175_s9 }
 0x169   :  { %v165_v35 = vsel %vm162_vm3, %v205_v33, %v163_v31  ;;  %v234_v36 = vpop.f32.mrf.mxu0  ;;  %p272_p5 = scmp.ne.s32.totalorder %s175_s9, %s271_s13  ;;  %p277_p7 = scmp.lt.s32.totalorder %s271_s13, %s271_s13 }
 0x16a   :  { %166 = vst [vmem:[#allocation2] sm:$0x3] %v165_v35 }
 0x16b   :  { %p278_p8 = por %p277_p7, %p276_p6 }
 0x16d   :  { %p279_p9 = pnand %p278_p8, %p272_p5 }
 0x16f   :  { %282 = shalt.err (!%p279_p9)
}
 0x170   :  { %177 = dma.vmem_to_hbm [thread:$0]  %s175_s9, 32, %s373_s3, [#allocation3]  }
 0x171   :  { %291 = dma.done.wait [#allocation3], 32  }
 0x172   :  { %292 = vsyncadd [#allocation3], 4294967264 }
 0x173   :  { %293 = dma.done.wait [#allocation5], 32  }
 0x174   :  { %294 = vsyncadd [#allocation5], 4294967264 }
 0x175   :  { %194 = vsyncpa [#allocation3], 1 }
 0x176   :  { %195 = vsyncpa [#allocation5], 1 }

</bundles_post_ra>
